<compile_context>
chip_gen: v5e
topology: v5e:2x2
jax: 0.10.0
libtpu: 0.0.40
codegen_flags: <defaults>
</compile_context>

<pallas_src>
import functools
import warnings

import jax
import jax.numpy as jnp
from jax.experimental import pallas as pl
from jax.experimental.pallas import tpu as pltpu


# ---------------------------------------------------------------------------
# Hardware-aware sizing
# ---------------------------------------------------------------------------

def _vmem_budget_bytes():
    """Returns (per-step x/out tile budget, scoped-VMEM limit) per generation.

    Double-buffered input + output is ~4x the tile plus the tiny weights, so
    an 8 MiB tile peaks around ~34 MiB — inside the 48 MiB limit we request on
    v7x (64 MiB physical per TC) and comfortably inside v5e/v6e's 128 MiB.
    """
    vmem_cap = None
    try:
        vmem_cap = getattr(pltpu.get_tpu_info(), "vmem_capacity_bytes", None)
    except Exception:
        vmem_cap = None
    if vmem_cap is not None and vmem_cap >= 96 * 1024 * 1024:
        # v5e / v6e (128 MiB physical): take extra headroom.
        return 8 * 1024 * 1024, 64 * 1024 * 1024
    # v7x (64 MiB per TC) or unknown hardware: stay conservative.
    return 8 * 1024 * 1024, 48 * 1024 * 1024


def _choose_batch_tile(batch, bytes_per_elem, budget_bytes):
    """Largest batch tile that fits the budget while preferring >= 4 grid
    steps (so both v7x TensorCores get >= 2 steps each and the BlockSpec
    pipeline actually overlaps DMA with compute), degrading to >= 2 steps,
    then to the largest fitting tile.  Returns None if even one batch element
    exceeds the budget (caller should switch to the spatially tiled path)."""
    divisors = [d for d in range(1, batch + 1) if batch % d == 0]
    fitting = [d for d in divisors if d * bytes_per_elem <= budget_bytes]
    if not fitting:
        return None
    for min_steps in (4, 2, 1):
        cands = [d for d in fitting if batch // d >= min_steps]
        if cands:
            return max(cands)
    return max(fitting)


def _choose_hw_tile(hw, bytes_per_row, budget_bytes):
    """Largest spatial tile that (a) divides HW, (b) is a multiple of 8 (the
    sublane quantum, required by the (8,128) block constraint) and (c) fits
    the per-step budget.  Falls back to the smallest multiple-of-8 divisor,
    then to the full HW."""
    best = None
    for d in range(8, hw + 1, 8):
        if hw % d == 0 and d * bytes_per_row <= budget_bytes:
            best = d
    if best is not None:
        return best
    for d in range(8, hw + 1, 8):
        if hw % d == 0:
            return d
    return hw


# ---------------------------------------------------------------------------
# Kernels
# ---------------------------------------------------------------------------

def _se_kernel(x_ref, w1t_ref, b1_ref, w2t_ref, b2_ref, o_ref):
    # x_ref/o_ref: (TB, HW, C) channels-last tile (lane dim = C)
    # w1t_ref: (C, Cr)  b1_ref: (1, Cr)  w2t_ref: (Cr, C)  b2_ref: (1, C)

    # Squeeze: mean over the spatial (sublane) axis, f32 accumulation only.
    # Reduce straight from the ref so the tile is not held live in vregs
    # across the excitation chain.
    pooled = jnp.mean(x_ref[...], axis=1, dtype=jnp.float32)            # (TB, C)

    # Excitation: fc1 -> ReLU -> fc2 -> sigmoid, row-vector (lane-dense) form.
    h = jnp.maximum(
        jnp.dot(pooled, w1t_ref[...], preferred_element_type=jnp.float32)
        + b1_ref[...], 0.0)                                             # (TB, Cr)
    s = jax.nn.sigmoid(
        jnp.dot(h, w2t_ref[...], preferred_element_type=jnp.float32)
        + b2_ref[...])                                                  # (TB, C)

    # Scale: re-read x_ref (VMEM, cheap) and apply the f32 gate; round only on
    # the final store.
    o_ref[...] = (x_ref[...].astype(jnp.float32) * s[:, None, :]).astype(o_ref.dtype)


def _se_pool_excite_kernel(x_ref, w1t_ref, b1_ref, w2t_ref, b2_ref, s_ref,
                           acc_ref, *, inv_hw):
    # Spatially tiled pass 1: accumulate per-(batch, channel) sums across the
    # HW grid axis, then compute the gate at the last spatial step.
    h_idx = pl.program_id(1)

    @pl.when(h_idx == 0)
    def _():
        acc_ref[...] = jnp.zeros_like(acc_ref)

    acc_ref[...] += jnp.sum(x_ref[...], axis=1, keepdims=True, dtype=jnp.float32)

    @pl.when(h_idx == pl.num_programs(1) - 1)
    def _():
        pooled = acc_ref[...][:, 0, :] * inv_hw                         # (1, C)
        hdn = jnp.maximum(
            jnp.dot(pooled, w1t_ref[...], preferred_element_type=jnp.float32)
            + b1_ref[...], 0.0)
        s = jax.nn.sigmoid(
            jnp.dot(hdn, w2t_ref[...], preferred_element_type=jnp.float32)
            + b2_ref[...])
        s_ref[...] = s[:, None, :]                                      # (1, 1, C) f32


def _se_scale_kernel(x_ref, s_ref, o_ref):
    # Spatially tiled pass 2: stream x and apply the per-(batch, channel) gate.
    o_ref[...] = (x_ref[...].astype(jnp.float32) * s_ref[...]).astype(o_ref.dtype)


def _se_kernel_nchw(x_ref, w1t_ref, b1_ref, w2t_ref, b2_ref, o_ref):
    # x_ref/o_ref: (TB, C, HW) -- lane dim = HW, sublane dim = C.
    pooled = jnp.mean(x_ref[...], axis=2, dtype=jnp.float32)            # (TB, C), XLU lane reduce
    h = jnp.maximum(
        jnp.dot(pooled, w1t_ref[...], preferred_element_type=jnp.float32)
        + b1_ref[...], 0.0)
    s = jax.nn.sigmoid(
        jnp.dot(h, w2t_ref[...], preferred_element_type=jnp.float32)
        + b2_ref[...])                                                  # (TB, C)
    o_ref[...] = (x_ref[...].astype(jnp.float32) * s[:, :, None]).astype(o_ref.dtype)


# ---------------------------------------------------------------------------
# Wrappers
# ---------------------------------------------------------------------------

def _weight_bytes(*arrs):
    return sum(a.size * jnp.dtype(a.dtype).itemsize for a in arrs)


def _se_single_pass(x_flat, w1t, b1r, w2t, b2r, TB, vmem_limit, donate_x):
    B, HW, C = x_flat.shape
    Cr = w1t.shape[1]
    itemsize = jnp.dtype(x_flat.dtype).itemsize
    cost = pl.CostEstimate(
        flops=2 * B * HW * C + 4 * B * C * Cr,
        transcendentals=B * C,
        bytes_accessed=2 * B * HW * C * itemsize + _weight_bytes(w1t, b1r, w2t, b2r),
    )
    return pl.pallas_call(
        _se_kernel,
        out_shape=jax.ShapeDtypeStruct((B, HW, C), x_flat.dtype),
        grid_spec=pltpu.PrefetchScalarGridSpec(
            num_scalar_prefetch=0,
            grid=(B // TB,),
            in_specs=[
                pl.BlockSpec((TB, HW, C), lambda b: (b, 0, 0)),
                pl.BlockSpec((C, Cr), lambda b: (0, 0)),
                pl.BlockSpec((1, Cr), lambda b: (0, 0)),
                pl.BlockSpec((Cr, C), lambda b: (0, 0)),
                pl.BlockSpec((1, C), lambda b: (0, 0)),
            ],
            out_specs=pl.BlockSpec((TB, HW, C), lambda b: (b, 0, 0)),
        ),
        compiler_params=pltpu.CompilerParams(
            dimension_semantics=("parallel",),
            vmem_limit_bytes=vmem_limit,
        ),
        cost_estimate=cost,
        input_output_aliases=({0: 0} if donate_x else {}),
    )(x_flat, w1t, b1r, w2t, b2r)


def _se_two_pass(x_flat, w1t, b1r, w2t, b2r, budget, vmem_limit, donate_x):
    """Fallback when one batch element exceeds the per-step tile budget:
    pass 1 pools + excites (resident (1,1,C) accumulator over the HW axis),
    pass 2 streams x again and applies the gate.  Inherent cost: 2 reads +
    1 write of x (the gate depends on the full spatial mean)."""
    B, HW, C = x_flat.shape
    Cr = w1t.shape[1]
    itemsize = jnp.dtype(x_flat.dtype).itemsize
    THW = _choose_hw_tile(HW, C * itemsize, budget)
    n_hw = max(1, HW // THW)
    grid = (B, n_hw)
    w_bytes = _weight_bytes(w1t, b1r, w2t, b2r)

    gate = pl.pallas_call(
        functools.partial(_se_pool_excite_kernel, inv_hw=1.0 / float(HW)),
        out_shape=jax.ShapeDtypeStruct((B, 1, C), jnp.float32),
        grid_spec=pltpu.PrefetchScalarGridSpec(
            num_scalar_prefetch=0,
            grid=grid,
            in_specs=[
                pl.BlockSpec((1, THW, C), lambda b, h: (b, h, 0)),
                pl.BlockSpec((C, Cr), lambda b, h: (0, 0)),
                pl.BlockSpec((1, Cr), lambda b, h: (0, 0)),
                pl.BlockSpec((Cr, C), lambda b, h: (0, 0)),
                pl.BlockSpec((1, C), lambda b, h: (0, 0)),
            ],
            out_specs=pl.BlockSpec((1, 1, C), lambda b, h: (b, 0, 0)),
            scratch_shapes=[pltpu.VMEM((1, 1, C), jnp.float32)],
        ),
        compiler_params=pltpu.CompilerParams(
            dimension_semantics=("parallel", "arbitrary"),
            vmem_limit_bytes=vmem_limit,
        ),
        cost_estimate=pl.CostEstimate(
            flops=B * HW * C + 4 * B * C * Cr,
            transcendentals=B * C,
            bytes_accessed=B * HW * C * itemsize + B * C * 4 + w_bytes,
        ),
    )(x_flat, w1t, b1r, w2t, b2r)

    out = pl.pallas_call(
        _se_scale_kernel,
        out_shape=jax.ShapeDtypeStruct((B, HW, C), x_flat.dtype),
        grid_spec=pltpu.PrefetchScalarGridSpec(
            num_scalar_prefetch=0,
            grid=grid,
            in_specs=[
                pl.BlockSpec((1, THW, C), lambda b, h: (b, h, 0)),
                pl.BlockSpec((1, 1, C), lambda b, h: (b, 0, 0)),
            ],
            out_specs=pl.BlockSpec((1, THW, C), lambda b, h: (b, h, 0)),
        ),
        compiler_params=pltpu.CompilerParams(
            dimension_semantics=("parallel", "parallel"),
            vmem_limit_bytes=vmem_limit,
        ),
        cost_estimate=pl.CostEstimate(
            flops=B * HW * C,
            transcendentals=0,
            bytes_accessed=2 * B * HW * C * itemsize + B * C * 4,
        ),
        input_output_aliases=({0: 0} if donate_x else {}),
    )(x_flat, gate)
    return out


def se_module(x, w1, b1, w2, b2, *, tile_budget_bytes=None, donate_x=False):
    """Channels-last SE block.

    x : (B, H, W, C) or (B, HW, C)
    w1: (Cr, C)  b1: (Cr,)   (PyTorch fc1: Conv2d(C, Cr, 1) -> (out, in))
    w2: (C, Cr)  b2: (C,)    (PyTorch fc2: Conv2d(Cr, C, 1))
    donate_x: alias x to the output (halves HBM footprint if caller donates x).

    Note: the gate is computed in f32 and applied to x promoted to f32; the
    result is rounded to x.dtype only on the final store (bf16 inputs differ
    from an all-f32 reference only by that final rounding).
    """
    orig_shape = x.shape
    if x.ndim == 4:
        B, H, W, C = x.shape
        HW = H * W
        x_flat = x.reshape(B, HW, C)        # free reshape, no transpose
    else:
        B, HW, C = x.shape
        x_flat = x
    Cr = w1.shape[0]

    if C % 128 != 0:
        # Lane-dense stores want C % 128 == 0; execution stays correct (masked
        # vst), just slower.  Padding x here would cost a full extra HBM pass,
        # which is worse than masked stores for a bandwidth-bound op, so we
        # only warn.  (SE-ResNet152 SE blocks all have C in {256,512,1024,2048}.)
        warnings.warn(f"se_module: C={C} is not a multiple of 128; stores will be masked.")

    budget_default, vmem_limit = _vmem_budget_bytes()
    budget = tile_budget_bytes if tile_budget_bytes is not None else budget_default

    # Pre-transpose the tiny weights so the in-kernel matmuls are row-vector
    # (lane-dense) oriented; biases as (1, N) row vectors.
    w1t = w1.T                              # (C, Cr)
    w2t = w2.T                              # (Cr, C)
    b1r = b1.reshape(1, Cr)
    b2r = b2.reshape(1, C)

    itemsize = jnp.dtype(x.dtype).itemsize
    bytes_per_elem = HW * C * itemsize
    TB = _choose_batch_tile(B, bytes_per_elem, budget)

    if TB is not None:
        out_flat = _se_single_pass(x_flat, w1t, b1r, w2t, b2r, TB, vmem_limit, donate_x)
    else:
        out_flat = _se_two_pass(x_flat, w1t, b1r, w2t, b2r, budget, vmem_limit, donate_x)
    return out_flat.reshape(orig_shape)


def se_module_nchw(x, w1, b1, w2, b2, *, tile_budget_bytes=None, donate_x=False):
    """NCHW-native SE block: pools over the lane (HW) axis and broadcasts the
    gate across lanes, so NCHW callers avoid the transpose round trip (which
    would roughly triple the cost of a pure HBM-streaming op)."""
    B, C, H, W = x.shape
    HW = H * W
    Cr = w1.shape[0]

    budget_default, vmem_limit = _vmem_budget_bytes()
    budget = tile_budget_bytes if tile_budget_bytes is not None else budget_default
    itemsize = jnp.dtype(x.dtype).itemsize
    bytes_per_elem = HW * C * itemsize
    TB = _choose_batch_tile(B, bytes_per_elem, budget)

    if TB is None:
        # TODO(synk): NCHW-native spatially/channel-tiled two-pass path; fall
        # back to the channels-last kernel via transposes (extra HBM passes).
        x_nhwc = jnp.transpose(x, (0, 2, 3, 1))
        out = se_module(x_nhwc, w1, b1, w2, b2, tile_budget_bytes=tile_budget_bytes)
        return jnp.transpose(out, (0, 3, 1, 2))

    x_flat = x.reshape(B, C, HW)
    w1t = w1.T
    w2t = w2.T
    b1r = b1.reshape(1, Cr)
    b2r = b2.reshape(1, C)

    cost = pl.CostEstimate(
        flops=2 * B * HW * C + 4 * B * C * Cr,
        transcendentals=B * C,
        bytes_accessed=2 * B * HW * C * itemsize + _weight_bytes(w1t, b1r, w2t, b2r),
    )
    out_flat = pl.pallas_call(
        _se_kernel_nchw,
        out_shape=jax.ShapeDtypeStruct((B, C, HW), x.dtype),
        grid_spec=pltpu.PrefetchScalarGridSpec(
            num_scalar_prefetch=0,
            grid=(B // TB,),
            in_specs=[
                pl.BlockSpec((TB, C, HW), lambda b: (b, 0, 0)),
                pl.BlockSpec((C, Cr), lambda b: (0, 0)),
                pl.BlockSpec((1, Cr), lambda b: (0, 0)),
                pl.BlockSpec((Cr, C), lambda b: (0, 0)),
                pl.BlockSpec((1, C), lambda b: (0, 0)),
            ],
            out_specs=pl.BlockSpec((TB, C, HW), lambda b: (b, 0, 0)),
        ),
        compiler_params=pltpu.CompilerParams(
            dimension_semantics=("parallel",),
            vmem_limit_bytes=vmem_limit,
        ),
        cost_estimate=cost,
        input_output_aliases=({0: 0} if donate_x else {}),
    )(x_flat, w1t, b1r, w2t, b2r)
    return out_flat.reshape(B, C, H, W)


# ---------------------------------------------------------------------------
# Pure-JAX references (match PyTorch SEModule semantics, computed in f32)
# ---------------------------------------------------------------------------

def se_module_ref(x, w1, b1, w2, b2):
    xf = x.astype(jnp.float32)
    pooled = jnp.mean(xf, axis=(1, 2))                                   # (B, C)
    h = jnp.maximum(pooled @ w1.astype(jnp.float32).T + b1.astype(jnp.float32), 0.0)
    s = jax.nn.sigmoid(h @ w2.astype(jnp.float32).T + b2.astype(jnp.float32))
    return xf * s[:, None, None, :]


def se_module_nchw_ref(x, w1, b1, w2, b2):
    xf = x.astype(jnp.float32)
    pooled = jnp.mean(xf, axis=(2, 3))                                   # (B, C)
    h = jnp.maximum(pooled @ w1.astype(jnp.float32).T + b1.astype(jnp.float32), 0.0)
    s = jax.nn.sigmoid(h @ w2.astype(jnp.float32).T + b2.astype(jnp.float32))
    return xf * s[:, :, None, None]


if __name__ == "__main__":
    key = jax.random.PRNGKey(0)
    kx, k1, k2, k3, k4, kn = jax.random.split(key, 6)

    B, H, W, C = 4, 16, 16, 128             # C multiple of 128 (lane-dense)
    reduction = 4
    Cr = C // reduction

    x = jax.random.normal(kx, (B, H, W, C), dtype=jnp.float32)           # channels-last
    w1 = 0.1 * jax.random.normal(k1, (Cr, C), dtype=jnp.float32)
    b1 = 0.1 * jax.random.normal(k2, (Cr,), dtype=jnp.float32)
    w2 = 0.1 * jax.random.normal(k3, (C, Cr), dtype=jnp.float32)
    b2 = 0.1 * jax.random.normal(k4, (C,), dtype=jnp.float32)

    ref = se_module_ref(x, w1, b1, w2, b2)

    # 1) single-pass channels-last, f32
    out = jax.block_until_ready(se_module(x, w1, b1, w2, b2))
    assert out.shape == x.shape and out.dtype == x.dtype
    assert jnp.allclose(out, ref, atol=1e-5, rtol=1e-5), "single-pass mismatch"

    # 2) single-pass with input/output aliasing offered
    out_alias = jax.block_until_ready(se_module(x, w1, b1, w2, b2, donate_x=True))
    assert jnp.allclose(out_alias, ref, atol=1e-5, rtol=1e-5), "aliased mismatch"

    # 3) spatially tiled two-pass fallback (forced via a tiny per-step budget)
    x2 = jax.random.normal(kn, (2, 16, 16, 128), dtype=jnp.float32)
    ref2 = se_module_ref(x2, w1, b1, w2, b2)
    out2 = jax.block_until_ready(
        se_module(x2, w1, b1, w2, b2, tile_budget_bytes=64 * 1024))
    assert jnp.allclose(out2, ref2, atol=1e-4, rtol=1e-4), "two-pass mismatch"

    # 4) bf16 input (gate computed in f32; rounding only on final store)
    x_bf = x.astype(jnp.bfloat16)
    out_bf = jax.block_until_ready(se_module(x_bf, w1, b1, w2, b2))
    assert out_bf.dtype == jnp.bfloat16
    ref_bf = se_module_ref(x_bf, w1, b1, w2, b2)
    assert jnp.allclose(out_bf.astype(jnp.float32), ref_bf, atol=3e-2, rtol=3e-2), \
        "bf16 mismatch"

    # 5) NCHW-native kernel (no transpose round trip)
    x_nchw = jnp.transpose(x[:2], (0, 3, 1, 2))                          # (2, 128, 16, 16)
    ref_nchw = se_module_nchw_ref(x_nchw, w1, b1, w2, b2)
    out_nchw = jax.block_until_ready(se_module_nchw(x_nchw, w1, b1, w2, b2))
    assert out_nchw.shape == x_nchw.shape
    assert jnp.allclose(out_nchw, ref_nchw, atol=1e-5, rtol=1e-5), "NCHW mismatch"

    print("KERNEL_OK")
</pallas_src>

<mosaic_0001>
module attributes {stable_mosaic.version = 11 : i64} {
  func.func @_se_kernel(%arg0: i32, %arg1: memref<1x256x128xf32, #tpu.memory_space<vmem>>, %arg2: memref<128x32xf32, #tpu.memory_space<vmem>>, %arg3: memref<1x32xf32, #tpu.memory_space<vmem>>, %arg4: memref<32x128xf32, #tpu.memory_space<vmem>>, %arg5: memref<1x128xf32, #tpu.memory_space<vmem>>, %arg6: memref<1x256x128xf32, #tpu.memory_space<vmem>>) attributes {dimension_semantics = [#tpu.dimension_semantics<parallel>], iteration_bounds = array<i64: 4>, scalar_prefetch = 0 : i64, scratch_operands = 0 : i64, tpu.core_type = #tpu.core_type<tc>, window_params = [{transform_indices = @transform_0, window_bounds = array<i64: 1, 256, 128>}, {pipeline_mode = #tpu.pipeline_mode<synchronous>, transform_indices = @transform_1, window_bounds = array<i64: 128, 32>}, {pipeline_mode = #tpu.pipeline_mode<synchronous>, transform_indices = @transform_2, window_bounds = array<i64: 1, 32>}, {pipeline_mode = #tpu.pipeline_mode<synchronous>, transform_indices = @transform_3, window_bounds = array<i64: 32, 128>}, {pipeline_mode = #tpu.pipeline_mode<synchronous>, transform_indices = @transform_4, window_bounds = array<i64: 1, 128>}, {transform_indices = @transform_5, window_bounds = array<i64: 1, 256, 128>}]} {
    %c0 = arith.constant 0 : index
    %c0_0 = arith.constant 0 : index
    %c0_1 = arith.constant 0 : index
    %0 = vector.load %arg1[%c0, %c0_0, %c0_1] : memref<1x256x128xf32, #tpu.memory_space<vmem>>, vector<1x256x128xf32>
    %cst = arith.constant dense<0.000000e+00> : vector<1x128xf32>
    %1 = vector.multi_reduction <add>, %0, %cst [1] : vector<1x256x128xf32> to vector<1x128xf32>
    %cst_2 = arith.constant 2.560000e+02 : f32
    %2 = vector.broadcast %cst_2 : f32 to vector<1x128xf32>
    %3 = arith.divf %1, %2 : vector<1x128xf32>
    %c0_3 = arith.constant 0 : index
    %c0_4 = arith.constant 0 : index
    %4 = vector.load %arg2[%c0_3, %c0_4] : memref<128x32xf32, #tpu.memory_space<vmem>>, vector<128x32xf32>
    %cst_5 = arith.constant dense<0.000000e+00> : vector<1x32xf32>
    %5 = tpu.matmul %3, %4, %cst_5 {dimension_numbers = #tpu.dot_dimension_numbers<[1], [0], [0], [1], [0, 0, 1, 1], [], []>} : vector<1x128xf32>, vector<128x32xf32>, vector<1x32xf32> -> vector<1x32xf32>
    %c0_6 = arith.constant 0 : index
    %c0_7 = arith.constant 0 : index
    %6 = vector.load %arg3[%c0_6, %c0_7] : memref<1x32xf32, #tpu.memory_space<vmem>>, vector<1x32xf32>
    %7 = arith.addf %5, %6 : vector<1x32xf32>
    %cst_8 = arith.constant 0.000000e+00 : f32
    %8 = vector.broadcast %cst_8 : f32 to vector<1x32xf32>
    %9 = arith.maximumf %7, %8 : vector<1x32xf32>
    %c0_9 = arith.constant 0 : index
    %c0_10 = arith.constant 0 : index
    %10 = vector.load %arg4[%c0_9, %c0_10] : memref<32x128xf32, #tpu.memory_space<vmem>>, vector<32x128xf32>
    %cst_11 = arith.constant dense<0.000000e+00> : vector<1x128xf32>
    %11 = tpu.matmul %9, %10, %cst_11 {dimension_numbers = #tpu.dot_dimension_numbers<[1], [0], [0], [1], [0, 0, 1, 1], [], []>} : vector<1x32xf32>, vector<32x128xf32>, vector<1x128xf32> -> vector<1x128xf32>
    %c0_12 = arith.constant 0 : index
    %c0_13 = arith.constant 0 : index
    %12 = vector.load %arg5[%c0_12, %c0_13] : memref<1x128xf32, #tpu.memory_space<vmem>>, vector<1x128xf32>
    %13 = arith.addf %11, %12 : vector<1x128xf32>
    %14 = arith.negf %13 : vector<1x128xf32>
    %15 = math.exp %14 : vector<1x128xf32>
    %cst_14 = arith.constant 1.000000e+00 : f32
    %16 = vector.broadcast %cst_14 : f32 to vector<1x128xf32>
    %17 = arith.addf %16, %15 : vector<1x128xf32>
    %18 = arith.divf %16, %17 : vector<1x128xf32>
    %c0_15 = arith.constant 0 : index
    %c0_16 = arith.constant 0 : index
    %c0_17 = arith.constant 0 : index
    %19 = vector.load %arg1[%c0_15, %c0_16, %c0_17] : memref<1x256x128xf32, #tpu.memory_space<vmem>>, vector<1x256x128xf32>
    %20 = vector.shape_cast %18 : vector<1x128xf32> to vector<1x1x128xf32>
    %21 = vector.broadcast %20 : vector<1x1x128xf32> to vector<1x256x128xf32>
    %22 = arith.mulf %19, %21 : vector<1x256x128xf32>
    %c0_18 = arith.constant 0 : index
    %c0_19 = arith.constant 0 : index
    %c0_20 = arith.constant 0 : index
    %23 = vector.load %arg6[%c0_18, %c0_19, %c0_20] : memref<1x256x128xf32, #tpu.memory_space<vmem>>, vector<1x256x128xf32>
    tpu.vector_store %arg6[%c0_18, %c0_19, %c0_20], %22 {strides = array<i32>} : memref<1x256x128xf32, #tpu.memory_space<vmem>>, vector<1x256x128xf32>,
    return
  }
  func.func @transform_0(%arg0: i32) -> (i32, i32, i32) {
    %c0_i32 = arith.constant 0 : i32
    %c0_i32_0 = arith.constant 0 : i32
    %c0_i32_1 = arith.constant 0 : i32
    return %arg0, %c0_i32, %c0_i32_0 : i32, i32, i32
  }
  func.func @transform_1(%arg0: i32) -> (i32, i32) {
    %c0_i32 = arith.constant 0 : i32
    %c0_i32_0 = arith.constant 0 : i32
    %c0_i32_1 = arith.constant 0 : i32
    return %c0_i32, %c0_i32_0 : i32, i32
  }
  func.func @transform_2(%arg0: i32) -> (i32, i32) {
    %c0_i32 = arith.constant 0 : i32
    %c0_i32_0 = arith.constant 0 : i32
    %c0_i32_1 = arith.constant 0 : i32
    return %c0_i32, %c0_i32_0 : i32, i32
  }
  func.func @transform_3(%arg0: i32) -> (i32, i32) {
    %c0_i32 = arith.constant 0 : i32
    %c0_i32_0 = arith.constant 0 : i32
    %c0_i32_1 = arith.constant 0 : i32
    return %c0_i32, %c0_i32_0 : i32, i32
  }
  func.func @transform_4(%arg0: i32) -> (i32, i32) {
    %c0_i32 = arith.constant 0 : i32
    %c0_i32_0 = arith.constant 0 : i32
    %c0_i32_1 = arith.constant 0 : i32
    return %c0_i32, %c0_i32_0 : i32, i32
  }
  func.func @transform_5(%arg0: i32) -> (i32, i32, i32) {
    %c0_i32 = arith.constant 0 : i32
    %c0_i32_0 = arith.constant 0 : i32
    %c0_i32_1 = arith.constant 0 : i32
    return %arg0, %c0_i32, %c0_i32_0 : i32, i32, i32
  }
}

</mosaic_0001>

<bundles_post_ra>
// kernel: tpu_custom_call.1
= control target key start
LH: loop header
LB: loop body
LE: loop exit
PB: predicated region body
PF: predicated region fallthrough
CT: control target
= control target key end

     0   :  { %10 = vsyncpa [#allocation3], 0  ;;  %s1196_s0 = inlined_call_operand.hbm [shape: f32[4,256,128], index: 0, kind: input, shape index: {}]   ;;  %s1197_s1 = inlined_call_operand.vmem [shape: f32[128,32], index: 1, kind: input, shape index: {}]   ;;  %s1198_s2 = inlined_call_operand.vmem [shape: f32[1,32], index: 2, kind: input, shape index: {}]   ;;  %s1199_s3 = inlined_call_operand.vmem [shape: f32[32,128], index: 3, kind: input, shape index: {}]   ;;  %s1200_s4 = inlined_call_operand.vmem [shape: f32[1,128], index: 4, kind: input, shape index: {}]   ;;  %s1201_s5 = inlined_call_operand.hbm [shape: f32[4,256,128], index: 5, kind: output, shape index: {}]  }
   0x1   :  { %12 = vsyncpa [#allocation3 + $0x1], 0 }
   0x2   :  { %13 = vsyncpa [#allocation4], 0 }
   0x3   :  { %15 = vsyncpa [#allocation4 + $0x1], 0  ;;  %s770_s18 = smov 0   ;;  %s772_s19 = smov 0  }
   0x4   :  { %s774_s20 = smov 0   ;;  %s776_s21 = smov 0  }
   0x5 LB: > { %s791_s22 = sadd.s32 4294967295, %s733_s21   ;;  %s562_s23 = sadd.s32 4294967294, %s733_s21   ;;  %s733_s21 = sphi %s776_s21, %s1210_s21   ;;  %s729_s20 = sphi %s774_s20, %s1209_s20   ;;  %s725_s19 = sphi %s772_s19, %s1208_s19   ;;  %s721_s18 = sphi %s770_s18, %s1207_s18  }
   0x6   : > { %s795_s24 = sadd.s32 1, %s733_s21   ;;  %s28_s25 = sadd.s32 1, %s729_s20 }
   0x7   : > { %s25_s26 = ssub.s32 %s733_s21, %s795_s24  ;;  %p35_p0 = scmp.ne.s32.totalorder %s729_s20, %s725_s19 }
   0x8   : > { %p26_p1 = scmp.eq.s32.totalorder %s25_s26, 0  ;;  %p36_p2 = scmp.eq.s32.totalorder %s733_s21, 0 }
   0x9   : > { %p41_p3 = scmp.ne.s32.totalorder %s725_s19, %s721_s18  ;;  %p42_p4 = scmp.eq.s32.totalorder %s791_s22, 0 }
   0xa   : > { %s807_s27 = scalar_select %p26_p1, %s729_s20, %s28_s25  }
   0xb   : > { %p809_p5 = por %p36_p2, %p35_p0  ;;  %p813_p6 = por %p42_p4, %p41_p3 }
   0xc   : > { %p149_p7 = scmp.eq.s32.totalorder %s791_s22, 3  ;;  %p155_p8 = scmp.eq.s32.totalorder %s562_s23, 3 }
   0xd   : > { %p592_p9 = scmp.lt.s32.totalorder %s733_s21, 4  ;;  %s187_s7 = sand.u32 1, %s729_s20  }
   0xe   : > { %p819_p10 = por %p149_p7, %p35_p0  ;;  %p823_p11 = por %p155_p8, %p41_p3 }
   0xf   : > { %s578_s8 = sshll.u32 %s733_s21, 8  ;;  %s565_s9 = sshll.u32 %s187_s7, 8 }
  0x10   : > { %s196_s12 = scalar_lea.hbm %s1196_s0, %s578_s8  ;;  %s191_s14 = scalar_lea.vmem [#allocation2], %s565_s9 }
  0x11   : > { %s197_s13 = sshll.u32 %s196_s12, 4  ;;  %s199_s15 = sshll.u32 %s191_s14, 4  ;;  %s198_s13 = int_to_ptr.hbm [resolvable:$true] %s197_s13  ;;  %s200_s15 = int_to_ptr.vmem [resolvable:$true] %s199_s15 }
  0x12   : > { %p834_p12 = pnand %p592_p9, %p809_p5  ;;  %p568_p13 = scmp.ge.s32.totalorder %s733_s21, 1 }
  0x13   : > { %p207_p0 = scmp.lt.s32.totalorder %s733_s21, 5  ;;  %s188_s17 = scalar_lea.sflag [#allocation3], %s187_s7 }
  0x14   : > { %s637_s23 = sshra.s32 %s198_s13, 4  ;;  %p641_p2 = pneg %p834_p12  ;;  %s638_s23 = int_to_ptr.hbm [resolvable:$true] %s637_s23 }
  0x15   : > { %s639_s25 = scalar_lea.hbm %s638_s23, 256  ;;  %s644_s28 = scalar_lea.hbm %s1196_s0, 1024 }
  0x16   : > { %p640_p1 = scmp.ne.s32.totalorder %s638_s23, %s639_s25  ;;  %p645_p5 = scmp.lt.s32.totalorder %s638_s23, %s1196_s0 }
  0x17   : > { %p646_p7 = scmp.lt.s32.totalorder %s644_s28, %s639_s25 }
  0x18   : > { %p642_p3 = pnand %p641_p2, %p640_p1 }
  0x19   : > { %p647_p8 = por %p646_p7, %p645_p5 }
  0x1a   : > { %p643_p4 = pneg %p642_p3 }
  0x1c   : > { %p648_p9 = pnand %p647_p8, %p643_p4 }
  0x1e   : > { %651 = shalt.err (!%p648_p9)
}
  0x1f   : > { %s735_s7 = smov 128   ;;  %s736_s11 = smov 8  }
  0x20   : > { %587 = dma.hbm_to_vmem [thread:$0]  (!%p834_p12), %s198_s13, 4096, %s200_s15, %s188_s17, %s735_s7, %s735_s7, %s736_s11  }
  0x21   : > { %p208_p1 = pnand %p568_p13, %p207_p0 }
  0x22   : > { %s855_s12 = sand.u32 (!%p208_p1), 1, %s725_s19  }
  0x23   : > { %211 = sbr.rel (%p208_p1) target bundleno = 445 (0x1bd), region = 40  ;;  %s569_s14 = sshll.u32 (!%p208_p1), %s855_s12, 8 }
  0x24   : > { %s214_s23 = scalar_lea.sflag (!%p208_p1), [#allocation3], %s855_s12  ;;  %s861_s25 = scalar_lea.vmem (!%p208_p1), [#allocation2], %s569_s14 }
  0x28   : > { %712 = dma.done.wait (%p813_p6), %s214_s23, 4096  }
  0x29   : > { %714 = vsyncadd (%p813_p6), %s214_s23, 4294963200  ;;  %v337_v0 = vld [vmem:[%s1197_s1 + $0x78] sm:$0xff]  ;;  %v336_v1 = vld [vmem:[%s1197_s1 + $0x70] sm:$0xff]  ;;  %vm365_vm1 = vcmask 261120   ;;  %s1075_s26 = scalar_lea.vmem [#allocation5], %s569_s14  ;;  %s579_s14 = sshll.u32 %s791_s22, 8 }
  0x2a   : > { %339 = vmatpush.msra.mxu0 %v337_v0  ;;  %v335_v2 = vld [vmem:[%s1197_s1 + $0x68] sm:$0xff]  ;;  %v334_v3 = vld [vmem:[%s1197_s1 + $0x60] sm:$0xff]  ;;  %v333_v6 = vld [vmem:[%s1197_s1 + $0x58] sm:$0xff]  ;;  %s485_s28 = scalar_lea.hbm %s1201_s5, %s579_s14  ;;  %s486_s22 = sshll.u32 %s1075_s26, 4  ;;  %s487_s22 = int_to_ptr.vmem [resolvable:$true] %s486_s22 }
  0x2b   : > { %v880_v4 = vld [vmem:[%s861_s25] sm:$0xff]  ;;  %v883_v5 = vld [vmem:[%s861_s25 + $0x8] sm:$0xff]  ;;  %v889_v7 = vld [vmem:[%s861_s25 + $0x10] sm:$0xff]  ;;  %s488_s9 = sshll.u32 %s485_s28, 4  ;;  %s687_s13 = scalar_lea.hbm %s1201_s5, 1024  ;;  %s489_s9 = int_to_ptr.hbm [resolvable:$true] %s488_s9 }
  0x2c   : > { %340 = vmatpush.msra.mxu0 %v336_v1  ;;  %v277_v8 = vadd.f32 %v883_v5, %v880_v4  ;;  %v894_v9 = vld [vmem:[%s861_s25 + $0x18] sm:$0xff]  ;;  %v332_v10 = vld [vmem:[%s1197_s1 + $0x50] sm:$0xff]  ;;  %v901_v12 = vld [vmem:[%s861_s25 + $0x20] sm:$0xff]  ;;  %s681_s10 = sshra.s32 %s489_s9, 4  ;;  %s682_s10 = int_to_ptr.hbm [resolvable:$true] %s681_s10 }
  0x2d   : > { %v331_v13 = vld [vmem:[%s1197_s1 + $0x48] sm:$0xff]  ;;  %v330_v16 = vld [vmem:[%s1197_s1 + $0x40] sm:$0xff]  ;;  %v915_v18 = vld [vmem:[%s861_s25 + $0x30] sm:$0xff]  ;;  %s683_s7 = scalar_lea.hbm %s682_s10, 256  ;;  %p688_p0 = scmp.lt.s32.totalorder %s682_s10, %s1201_s5 }
  0x2e   : > { %341 = vmatpush.msra.mxu0 %v335_v2  ;;  %v278_v11 = vadd.f32 %v277_v8, %v889_v7  ;;  %v908_v15 = vld [vmem:[%s861_s25 + $0x28] sm:$0xff]  ;;  %v329_v19 = vld [vmem:[%s1197_s1 + $0x38] sm:$0xff]  ;;  %v328_v22 = vld [vmem:[%s1197_s1 + $0x30] sm:$0xff]  ;;  %p684_p6 = scmp.ne.s32.totalorder %s682_s10, %s683_s7  ;;  %p689_p2 = scmp.lt.s32.totalorder %s687_s13, %s683_s7 }
  0x2f   : > { %v922_v21 = vld [vmem:[%s861_s25 + $0x38] sm:$0xff]  ;;  %v929_v24 = vld [vmem:[%s861_s25 + $0x40] sm:$0xff]  ;;  %v327_v25 = vld [vmem:[%s1197_s1 + $0x28] sm:$0xff] }
  0x30   : > { %342 = vmatpush.msra.mxu0 %v334_v3  ;;  %v279_v14 = vadd.f32 %v278_v11, %v894_v9  ;;  %v936_v27 = vld [vmem:[%s861_s25 + $0x48] sm:$0xff]  ;;  %v326_v28 = vld [vmem:[%s1197_s1 + $0x20] sm:$0xff]  ;;  %v943_v30 = vld [vmem:[%s861_s25 + $0x50] sm:$0xff]  ;;  %v737_v3 = vmov 256.0   ;;  %p685_p12 = pnand %p684_p6, %p819_p10  ;;  %p690_p3 = por %p689_p2, %p688_p0 }
  0x31   : > { %v325_v31 = vld [vmem:[%s1197_s1 + $0x18] sm:$0xff]  ;;  %v324_v34 = vld [vmem:[%s1197_s1 + $0x10] sm:$0xff]  ;;  %v957_v36 = vld [vmem:[%s861_s25 + $0x60] sm:$0xff]  ;;  %631 = vrcp.f32 %v737_v3 }
  0x32   : > { %343 = vmatpush.msra.mxu0 %v333_v6  ;;  %v280_v17 = vadd.f32 %v279_v14, %v901_v12  ;;  %v950_v33 = vld [vmem:[%s861_s25 + $0x58] sm:$0xff]  ;;  %v323_v37 = vld [vmem:[%s1197_s1 + $0x8] sm:$0xff]  ;;  %v322_v40 = vld [vmem:[%s1197_s1] sm:$0xff]  ;;  %p686_p13 = pneg %p685_p12 }
  0x33   : > { %v964_v39 = vld [vmem:[%s861_s25 + $0x68] sm:$0xff]  ;;  %v971_v42 = vld [vmem:[%s861_s25 + $0x70] sm:$0xff]  ;;  %v975_v44 = vld [vmem:[%s861_s25 + $0x78] sm:$0xff] }
  0x34   : > { %344 = vmatpush.msra.mxu0 %v332_v10  ;;  %v281_v20 = vadd.f32 %v280_v17, %v908_v15  ;;  %v979_v46 = vld [vmem:[%s861_s25 + $0x80] sm:$0xff]  ;;  %v983_v48 = vld [vmem:[%s861_s25 + $0x88] sm:$0xff]  ;;  %v987_v50 = vld [vmem:[%s861_s25 + $0x90] sm:$0xff]  ;;  %p691_p4 = pnand %p690_p3, %p686_p13 }
  0x35   : > { %v991_v52 = vld [vmem:[%s861_s25 + $0x98] sm:$0xff]  ;;  %v995_v54 = vld [vmem:[%s861_s25 + $0xa0] sm:$0xff]  ;;  %v999_v56 = vld [vmem:[%s861_s25 + $0xa8] sm:$0xff] }
  0x36   : > { %345 = vmatpush.msra.mxu0 %v331_v13  ;;  %v282_v23 = vadd.f32 %v281_v20, %v915_v18  ;;  %v1003_v58 = vld [vmem:[%s861_s25 + $0xb0] sm:$0xff]  ;;  %v1007_v60 = vld [vmem:[%s861_s25 + $0xb8] sm:$0xff]  ;;  %v1011_v62 = vld [vmem:[%s861_s25 + $0xc0] sm:$0xff] }
  0x37   : > { %v363_v0 = vld [vmem:[%s1199_s3 + $0x18] sm:$0xff]  ;;  %v1018_v1 = vld [vmem:[%s861_s25 + $0xc8] sm:$0xff]  ;;  %v1022_v6 = vld [vmem:[%s861_s25 + $0xd0] sm:$0xff]  ;;  %v632_v14 = vpop.eup %631 }
  0x38   : > { %346 = vmatpush.msra.mxu0 %v330_v16  ;;  %v283_v26 = vadd.f32 %v282_v23, %v922_v21  ;;  %381 = vmatpush.msra.mxu1 %v363_v0  ;;  %v1026_v10 = vld [vmem:[%s861_s25 + $0xd8] sm:$0xff]  ;;  %v1030_v13 = vld [vmem:[%s861_s25 + $0xe0] sm:$0xff]  ;;  %v1034_v17 = vld [vmem:[%s861_s25 + $0xe8] sm:$0xff]  ;;  %vm319_vm0 = vweird.f32 %v632_v14 }
  0x39   : > { %v1038_v20 = vld [vmem:[%s861_s25 + $0xf0] sm:$0xff] }
  0x3a   : > { %347 = vmatpush.msra.mxu0 %v329_v19  ;;  %v284_v29 = vadd.f32 %v283_v26, %v929_v24 }
  0x3c   : > { %348 = vmatpush.msra.mxu0 %v328_v22  ;;  %v285_v32 = vadd.f32 %v284_v29, %v936_v27  ;;  %v315_v22 = vmul.f32 256.0, %v632_v14 }
  0x3e   : > { %349 = vmatpush.msra.mxu0 %v327_v25  ;;  %v286_v35 = vadd.f32 %v285_v32, %v943_v30  ;;  %v1042_v25 = vld [vmem:[%s861_s25 + $0xf8] sm:$0xff]  ;;  %s474_s25 = scalar_lea.sflag [#allocation4], %s855_s12 }
  0x40   : > { %350 = vmatpush.msra.mxu0 %v326_v28  ;;  %v287_v38 = vadd.f32 %v286_v35, %v950_v33  ;;  %v316_v28 = vsub.f32 1.0, %v315_v22 }
  0x42   : > { %351 = vmatpush.msra.mxu0 %v325_v31  ;;  %v288_v41 = vadd.f32 %v287_v38, %v957_v36  ;;  %v317_v32 = vmul.f32 %v632_v14, %v316_v28 }
  0x44   : > { %352 = vmatpush.msra.mxu0 %v324_v34  ;;  %v289_v43 = vadd.f32 %v288_v41, %v964_v39 }
  0x46   : > { %353 = vmatpush.msra.mxu0 %v323_v37  ;;  %v290_v45 = vadd.f32 %v289_v43, %v971_v42  ;;  %v318_v37 = vadd.f32 %v632_v14, %v317_v32 }
  0x48   : > { %354 = vmatpush.msra.mxu0 %v322_v40  ;;  %v291_v47 = vadd.f32 %v290_v45, %v975_v44  ;;  %v320_v41 = vsel %vm319_vm0, %v632_v14, %v318_v37 }
  0x4a   : > { %v292_v49 = vadd.f32 %v291_v47, %v979_v46  ;;  %v362_v47 = vld [vmem:[%s1199_s3 + $0x10] sm:$0xff] }
  0x4b   : > { %382 = vmatpush.msra.mxu1 %v362_v47 }
  0x4c   : > { %v293_v51 = vadd.f32 %v292_v49, %v983_v48  ;;  %v361_v49 = vld [vmem:[%s1199_s3 + $0x8] sm:$0xff] }
  0x4d   : > { %383 = vmatpush.msra.mxu1 %v361_v49 }
  0x4e   : > { %v294_v53 = vadd.f32 %v293_v51, %v987_v50  ;;  %v360_v51 = vld [vmem:[%s1199_s3] sm:$0xff] }
  0x4f   : > { %384 = vmatpush.msra.mxu1 %v360_v51 }
  0x50   : > { %v295_v55 = vadd.f32 %v294_v53, %v991_v52  ;;  %v338_v53 = vld [vmem:[%s1198_s2] sm:$0x1] }
  0x52   : > { %v296_v57 = vadd.f32 %v295_v55, %v995_v54 }
  0x54   : > { %v297_v59 = vadd.f32 %v296_v57, %v999_v56 }
  0x56   : > { %v298_v61 = vadd.f32 %v297_v59, %v1003_v58 }
  0x58   : > { %v299_v63 = vadd.f32 %v298_v61, %v1007_v60  ;;  %v364_v61 = vld [vmem:[%s1200_s4] sm:$0x1] }
  0x5a   : > { %v300_v2 = vadd.f32 %v299_v63, %v1011_v62 }
  0x5c   : > { %v301_v8 = vadd.f32 %v300_v2, %v1018_v1 }
  0x5e   : > { %v302_v11 = vadd.f32 %v301_v8, %v1022_v6 }
  0x60   : > { %v303_v16 = vadd.f32 %v302_v11, %v1026_v10 }
  0x62   : > { %v304_v19 = vadd.f32 %v303_v16, %v1030_v13 }
  0x64   : > { %v305_v23 = vadd.f32 %v304_v19, %v1034_v17 }
  0x66   : > { %v306_v26 = vadd.f32 %v305_v23, %v1038_v20 }
  0x68   : > { %v307_v29 = vadd.f32 %v306_v26, %v1042_v25 }
  0x6a   : > { %v308_v31 = vrot.slane %v307_v29, 4 }
  0x6c   : > { %v309_v34 = vadd.f32 %v308_v31, %v307_v29 }
  0x6e   : > { %v310_v35 = vrot.slane %v309_v34, 2 }
  0x70   : > { %v311_v38 = vadd.f32 %v310_v35, %v309_v34 }
  0x72   : > { %v312_v40 = vrot.slane %v311_v38, 1 }
  0x74   : > { %v313_v43 = vadd.f32 %v312_v40, %v311_v38 }
  0x76   : > { %v321_v45 = vmul.f32 %v320_v41, %v313_v43 }
  0x78   : > { %355 = vmatmul.f32.vlgmr.msra.gmra.mxu0 %v321_v45 }
  0xf5   : > { %v356_v55 = vpop.f32.mrf.mxu0 }
  0xf6   : > { %v357_v57 = vadd.f32 %v356_v55, %v338_v53 }
  0xf8   : > { %v359_v59 = vmax.f32 %v357_v57, 0.0 }
  0xfa   : > { %571 = vmatmul.msk.f32.vlgmr.msra.gmra.mxu1 %vm365_vm1, %v359_v59 }
 0x177   : > { %v386_v63 = vpop.f32.mrf.mxu1 }
 0x178   : > { %v387_v0 = vadd.f32 %v386_v63, %v364_v61 }
 0x17a   : > { %v572_v2 = vmul.f32 -1.442695, %v387_v0 }
 0x17c   : > { %633 = vpow2.f32 %v572_v2 }
 0x182   : > { %v634_v3 = vpop.eup %633 }
 0x183   : > { %v392_v8 = vadd.f32 1.0, %v634_v3 }
 0x185   : > { %635 = vrcp.f32 %v392_v8  ;;  %v404_v19 = vand.u32 2147483648, %v392_v8  ;;  %v402_v23 = vand.u32 2147483647, %v392_v8  ;;  %vm398_vm3 = vweird.f32 %v392_v8 }
 0x187   : > { %v405_v28 = vor.u32 1.1754944e-38, %v404_v19  ;;  %vm403_vm5 = vcmp.eq.f32.partialorder %v402_v23, 8.507059e+37 }
 0x18b   : > { %v636_v11 = vpop.eup %635 }
 0x18c   : > { %v394_v14 = vmul.f32 %v636_v11, %v392_v8  ;;  %vm399_vm2 = vweird.f32 %v636_v11 }
 0x18d   : > { %vm400_vm4 = vmor %vm398_vm3, %vm399_vm2 }
 0x18e   : > { %v395_v16 = vsub.f32 1.0, %v394_v14 }
 0x190   : > { %v396_v22 = vmul.f32 %v636_v11, %v395_v16 }
 0x192   : > { %v397_v26 = vadd.f32 %v636_v11, %v396_v22 }
 0x194   : > { %v401_v29 = vsel %vm400_vm4, %v636_v11, %v397_v26 }
 0x195   : > { %v406_v31 = vsel %vm403_vm5, %v405_v28, %v401_v29 }
 0x196   : > { %v1061_v32 = vperm.slane %v406_v31, 0 }
 0x198   : > { %v409_v34 = vmul.f32 %v1061_v32, %v880_v4  ;;  %v410_v35 = vmul.f32 %v1061_v32, %v883_v5  ;;  %v411_v37 = vmul.f32 %v1061_v32, %v889_v7  ;;  %v412_v38 = vmul.f32 %v1061_v32, %v894_v9 }
 0x199   : > { %v413_v40 = vmul.f32 %v1061_v32, %v901_v12  ;;  %v414_v4 = vmul.f32 %v1061_v32, %v908_v15  ;;  %v415_v5 = vmul.f32 %v1061_v32, %v915_v18  ;;  %v416_v7 = vmul.f32 %v1061_v32, %v922_v21 }
 0x19a   : > { %441 = vst [vmem:[%s1075_s26] sm:$0xff] %v409_v34  ;;  %v417_v9 = vmul.f32 %v1061_v32, %v929_v24  ;;  %v418_v12 = vmul.f32 %v1061_v32, %v936_v27  ;;  %v419_v15 = vmul.f32 %v1061_v32, %v943_v30  ;;  %v420_v18 = vmul.f32 %v1061_v32, %v950_v33 }
 0x19b   : > { %442 = vst [vmem:[%s1075_s26 + $0x8] sm:$0xff] %v410_v35  ;;  %v421_v21 = vmul.f32 %v1061_v32, %v957_v36  ;;  %v422_v24 = vmul.f32 %v1061_v32, %v964_v39  ;;  %v423_v27 = vmul.f32 %v1061_v32, %v971_v42  ;;  %v424_v30 = vmul.f32 %v1061_v32, %v975_v44 }
 0x19c   : > { %443 = vst [vmem:[%s1075_s26 + $0x10] sm:$0xff] %v411_v37  ;;  %v425_v33 = vmul.f32 %v1061_v32, %v979_v46  ;;  %v426_v36 = vmul.f32 %v1061_v32, %v983_v48  ;;  %v427_v39 = vmul.f32 %v1061_v32, %v987_v50  ;;  %v428_v42 = vmul.f32 %v1061_v32, %v991_v52 }
 0x19d   : > { %444 = vst [vmem:[%s1075_s26 + $0x18] sm:$0xff] %v412_v38  ;;  %v429_v44 = vmul.f32 %v1061_v32, %v995_v54  ;;  %v430_v46 = vmul.f32 %v1061_v32, %v999_v56  ;;  %v431_v48 = vmul.f32 %v1061_v32, %v1003_v58  ;;  %v432_v50 = vmul.f32 %v1061_v32, %v1007_v60 }
 0x19e   : > { %445 = vst [vmem:[%s1075_s26 + $0x20] sm:$0xff] %v413_v40  ;;  %v433_v52 = vmul.f32 %v1061_v32, %v1011_v62  ;;  %v434_v54 = vmul.f32 %v1061_v32, %v1018_v1  ;;  %v435_v56 = vmul.f32 %v1061_v32, %v1022_v6  ;;  %v436_v58 = vmul.f32 %v1061_v32, %v1026_v10 }
 0x19f   : > { %446 = vst [vmem:[%s1075_s26 + $0x28] sm:$0xff] %v414_v4  ;;  %v437_v60 = vmul.f32 %v1061_v32, %v1030_v13  ;;  %v438_v62 = vmul.f32 %v1061_v32, %v1034_v17  ;;  %v439_v1 = vmul.f32 %v1061_v32, %v1038_v20  ;;  %v440_v6 = vmul.f32 %v1061_v32, %v1042_v25 }
 0x1a0   : > { %447 = vst [vmem:[%s1075_s26 + $0x30] sm:$0xff] %v415_v5 }
 0x1a1   : > { %448 = vst [vmem:[%s1075_s26 + $0x38] sm:$0xff] %v416_v7 }
 0x1a2   : > { %449 = vst [vmem:[%s1075_s26 + $0x40] sm:$0xff] %v417_v9 }
 0x1a3   : > { %450 = vst [vmem:[%s1075_s26 + $0x48] sm:$0xff] %v418_v12 }
 0x1a4   : > { %451 = vst [vmem:[%s1075_s26 + $0x50] sm:$0xff] %v419_v15 }
 0x1a5   : > { %452 = vst [vmem:[%s1075_s26 + $0x58] sm:$0xff] %v420_v18 }
 0x1a6   : > { %453 = vst [vmem:[%s1075_s26 + $0x60] sm:$0xff] %v421_v21 }
 0x1a7   : > { %454 = vst [vmem:[%s1075_s26 + $0x68] sm:$0xff] %v422_v24 }
 0x1a8   : > { %455 = vst [vmem:[%s1075_s26 + $0x70] sm:$0xff] %v423_v27 }
 0x1a9   : > { %456 = vst [vmem:[%s1075_s26 + $0x78] sm:$0xff] %v424_v30 }
 0x1aa   : > { %457 = vst [vmem:[%s1075_s26 + $0x80] sm:$0xff] %v425_v33 }
 0x1ab   : > { %458 = vst [vmem:[%s1075_s26 + $0x88] sm:$0xff] %v426_v36 }
 0x1ac   : > { %459 = vst [vmem:[%s1075_s26 + $0x90] sm:$0xff] %v427_v39 }
 0x1ad   : > { %460 = vst [vmem:[%s1075_s26 + $0x98] sm:$0xff] %v428_v42 }
 0x1ae   : > { %461 = vst [vmem:[%s1075_s26 + $0xa0] sm:$0xff] %v429_v44 }
 0x1af   : > { %462 = vst [vmem:[%s1075_s26 + $0xa8] sm:$0xff] %v430_v46 }
 0x1b0   : > { %463 = vst [vmem:[%s1075_s26 + $0xb0] sm:$0xff] %v431_v48 }
 0x1b1   : > { %464 = vst [vmem:[%s1075_s26 + $0xb8] sm:$0xff] %v432_v50 }
 0x1b2   : > { %465 = vst [vmem:[%s1075_s26 + $0xc0] sm:$0xff] %v433_v52 }
 0x1b3   : > { %466 = vst [vmem:[%s1075_s26 + $0xc8] sm:$0xff] %v434_v54 }
 0x1b4   : > { %467 = vst [vmem:[%s1075_s26 + $0xd0] sm:$0xff] %v435_v56 }
 0x1b5   : > { %468 = vst [vmem:[%s1075_s26 + $0xd8] sm:$0xff] %v436_v58 }
 0x1b6   : > { %469 = vst [vmem:[%s1075_s26 + $0xe0] sm:$0xff] %v437_v60 }
 0x1b7   : > { %470 = vst [vmem:[%s1075_s26 + $0xe8] sm:$0xff] %v438_v62 }
 0x1b8   : > { %471 = vst [vmem:[%s1075_s26 + $0xf0] sm:$0xff] %v439_v1 }
 0x1b9   : > { %472 = vst [vmem:[%s1075_s26 + $0xf8] sm:$0xff] %v440_v6 }
 0x1ba   : > { %694 = shalt.err (!%p691_p4)
}
 0x1bb   : > { %s738_s12 = smov 128   ;;  %s739_s17 = smov 8  }
 0x1bc   : > { %582 = dma.vmem_to_hbm [thread:$0]  (%p819_p10), %s487_s22, 4096, %s489_s9, %s474_s25, %s738_s12, %s738_s12, %s739_s17  }
 0x1bd PF: > { %p593_p5 = scmp.ge.s32.totalorder %s733_s21, 2  ;;  %s503_s26 = sand.u32 1, %s721_s18  }
 0x1be   : > { %s504_s14 = scalar_lea.sflag [#allocation4], %s503_s26 }
 0x1bf   : > { %p589_p7 = pnand %p593_p5, %p823_p11 }
 0x1c1   : > { %p590_p8 = pneg %p589_p7 }
 0x1c3   : > { %716 = dma.done.wait (%p590_p8), %s504_s14, 4096  }
 0x1c4   : > { %718 = vsyncadd (%p590_p8), %s504_s14, 4294963200  ;;  %p18_p9 = scmp.ge.s32.totalorder %s795_s24, 6   ;;  %s1207_s18 = smov %s725_s19 }
 0x1c5   : > { %s1208_s19 = smov %s729_s20  ;;  %s1209_s20 = smov %s807_s27 }
 0x1c6   : > { %s1210_s21 = smov %s795_s24  ;;  %20 = sbr.rel (!%p18_p9) target bundleno = 5 (0x5), region = 85 }
 0x1cb   :  { %510 = vsyncpa [#allocation3], 1 }
 0x1cc   :  { %512 = vsyncpa [#allocation3 + $0x1], 1 }
 0x1cd   :  { %513 = vsyncpa [#allocation4], 1 }
 0x1ce   :  { %515 = vsyncpa [#allocation4 + $0x1], 1 }

</bundles_post_ra>
